<compile_context>
chip_gen: v5e
topology: v5e:2x2
jax: 0.10.0
libtpu: 0.0.40
codegen_flags: <defaults>
</compile_context>

<pallas_src>
import functools

import jax
import jax.numpy as jnp
from jax.experimental import pallas as pl
from jax.experimental.pallas import tpu as pltpu


def _round_up(x, m):
    return ((x + m - 1) // m) * m


def _chip_profile():
    """Best-effort per-generation tuning knobs (tile sizes, VMEM budget, #TensorCores)."""
    kind = ""
    try:
        kind = jax.devices()[0].device_kind.lower()
    except Exception:
        pass
    if "v6" in kind:
        # 128 MiB VMEM, roofline crossover ~655 flops/byte -> big row tiles.
        return {"name": "v6e", "vmem_cap": 100 << 20, "tm": 1024, "num_tc": 1, "tn_target": 512}
    if "v5" in kind or "v4" in kind:
        # 128 MiB VMEM, crossover ~240; larger tn halves accumulator writeback steps.
        return {"name": "v5e", "vmem_cap": 100 << 20, "tm": 512, "num_tc": 1, "tn_target": 1024}
    if "7" in kind:
        # 64 MiB VMEM per TC -> cap well below physical; 2 TCs share the chip.
        return {"name": "v7x", "vmem_cap": 48 << 20, "tm": 512, "num_tc": 2, "tn_target": 512}
    # Unknown: conservative (assume 64 MiB VMEM, 2 TCs).
    return {"name": "unknown", "vmem_cap": 48 << 20, "tm": 512, "num_tc": 2, "tn_target": 512}


def _pick_hidden_tile(H, target=512):
    """Prefer tn as a multiple of 256 (full MXU occupancy on v6e/v7x); avoid 128 unless forced."""
    for c in sorted({target, 1024, 768, 512, 256}, reverse=True):
        if c % 256 == 0 and c <= H and H % c == 0:
            return c
    for c in (384, 128):
        if c <= H and H % c == 0:
            return c
    return H  # block == full array dim is always legal


# ----------------------------------------------------------------------------- kernels


def _ffn_resident_kernel(x_ref, w1_ref, b1_ref, w2_ref, b2_ref, o_ref, *, H, approx_gelu):
    # x_ref: (tm, D); w1_ref: (D, 2H) fused [a | gates]; w2_ref: (H, D); biases f32.
    x = x_ref[...]
    # Single fused first matmul; split at lane offset H (multiple of 128 in practice).
    h = jnp.dot(x, w1_ref[...], preferred_element_type=jnp.float32) + b1_ref[...]
    a = h[:, :H]
    g = h[:, H:]
    y = a * jax.nn.gelu(g, approximate=approx_gelu)
    o_ref[...] = (jnp.dot(y.astype(w2_ref.dtype), w2_ref[...],
                          preferred_element_type=jnp.float32)
                  + b2_ref[...]).astype(o_ref.dtype)


def _ffn_streamed_kernel(x_ref, w1a_ref, w1g_ref, b1a_ref, b1g_ref, w2_ref, b2_ref,
                         o_ref, acc_ref, *, approx_gelu):
    # x_ref: (tm, D); w1a/w1g: (D, tn); b1a/b1g: (1, tn); w2: (tn, D); b2: (1, D).
    # acc_ref: (tm, D) f32 accumulator resident across the hidden-tile ("arbitrary") axis.
    j = pl.program_id(1)

    @pl.when(j == 0)
    def _():
        acc_ref[...] = jnp.zeros_like(acc_ref)

    x = x_ref[...]
    a = jnp.dot(x, w1a_ref[...], preferred_element_type=jnp.float32) + b1a_ref[...]
    g = jnp.dot(x, w1g_ref[...], preferred_element_type=jnp.float32) + b1g_ref[...]
    y = a * jax.nn.gelu(g, approximate=approx_gelu)
    acc_ref[...] += jnp.dot(y.astype(w2_ref.dtype), w2_ref[...],
                            preferred_element_type=jnp.float32)

    @pl.when(j == pl.num_programs(1) - 1)
    def _():
        o_ref[...] = (acc_ref[...] + b2_ref[...]).astype(o_ref.dtype)


# --------------------------------------------------------------------------- param prep


def prepare_ffn_params(w1, b1, w2, b2, *, use_bf16=True, approx_gelu=None,
                       force_streamed=False):
    """One-time prep: dtype cast, GEGLU split/layout, execution-path and tile selection.

    w1: (D, 2H) with columns [a-half | gate-half]; b1: (2H,); w2: (H, D); b2: (D,).
    Do this ONCE and reuse the returned params across calls (avoids an extra HBM pass
    over the weights on every forward).
    """
    D, H2 = w1.shape
    H = H2 // 2
    assert w2.shape == (H, D) and b1.shape == (H2,) and b2.shape == (D,)

    chip = _chip_profile()
    mxu_dtype = jnp.bfloat16 if use_bf16 else jnp.float32
    isz = jnp.dtype(mxu_dtype).itemsize
    if approx_gelu is None:
        # tanh-gelu runs on the EUP (otherwise idle) on v6e/v7x; keep exact erf on the
        # f32 path (parity with torch F.gelu default) and on v5e (MXU-bound anyway).
        approx_gelu = bool(use_bf16) and chip["name"] != "v5e"

    cap = chip["vmem_cap"]
    weight_bytes = isz * (D * H2 + H * D) + 4 * (H2 + D)

    # Try the weight-resident path: weights DMA'd once, no hidden-axis reduction.
    resident_tm = None
    if not force_streamed:
        for tm_cand in sorted({chip["tm"], 512, 256, 128}, reverse=True):
            est = (2 * weight_bytes                       # (conservatively) double-buffered weights
                   + 2 * (isz + 4) * tm_cand * D          # double-buffered x / out tiles
                   + 4 * tm_cand * (H2 + H)               # in-kernel f32 intermediates (h, y)
                   + (4 << 20))                           # slack for compiler scratch
            if est <= int(0.85 * cap):
                resident_tm = tm_cand
                break

    params = {
        "D": D, "H": H, "use_bf16": use_bf16, "mxu_dtype": mxu_dtype,
        "approx_gelu": approx_gelu, "chip": chip,
        "w2": w2.astype(mxu_dtype),
        "b2": b2.reshape(1, D).astype(jnp.float32),
    }
    if resident_tm is not None:
        params.update(
            resident=True, tm=resident_tm,
            w1=w1.astype(mxu_dtype),                       # (D, 2H), already [a | gates]
            b1=b1.reshape(1, H2).astype(jnp.float32),
        )
    else:
        params.update(
            resident=False, tm=chip["tm"],
            tn=_pick_hidden_tile(H, target=chip["tn_target"]),
            w1a=w1[:, :H].astype(mxu_dtype),
            w1g=w1[:, H:].astype(mxu_dtype),
            b1a=b1[:H].reshape(1, H).astype(jnp.float32),
            b1g=b1[H:].reshape(1, H).astype(jnp.float32),
        )
    return params


# ------------------------------------------------------------------------------ forward


def feed_forward(x, params):
    """x: (B, S, D) -> (B, S, D). `params` from prepare_ffn_params (dropout = identity)."""
    B, S, D = x.shape
    assert D == params["D"]
    H = params["H"]
    chip = params["chip"]
    mxu_dtype = params["mxu_dtype"]
    approx_gelu = params["approx_gelu"]
    out_dtype = x.dtype

    M = B * S
    # Row alignment matches sublane packing: 16 rows for bf16, 8 for f32.
    row_align = 16 if params["use_bf16"] else 8
    tm = min(params["tm"], _round_up(M, row_align))

    # Guarantee >= num_tc row tiles so the "parallel" axis splits across v7x's two TCs.
    num_tc = chip["num_tc"]
    if num_tc > 1 and M > num_tc * row_align and (M + tm - 1) // tm < num_tc:
        tm = _round_up((M + num_tc - 1) // num_tc, row_align)

    in_isz = jnp.dtype(mxu_dtype).itemsize
    out_isz = jnp.dtype(out_dtype).itemsize

    if not params["resident"]:
        tn = params["tn"]

        def _stream_est(tm_):
            return (2 * in_isz * (tm_ * D + 2 * D * tn + tn * D)   # x, w1a, w1g, w2 tiles (x2 buf)
                    + 2 * 4 * (2 * tn + D)                          # biases
                    + 2 * out_isz * tm_ * D                         # output tile (x2 buf)
                    + 4 * tm_ * D                                   # f32 accumulator scratch
                    + 3 * 4 * tm_ * tn)                             # in-kernel f32 a/g/y
        # Shrink tm if the streamed tile footprint would exceed the per-chip VMEM budget.
        while _stream_est(tm) > int(0.9 * chip["vmem_cap"]) and tm > row_align:
            tm = max(row_align, _round_up(tm // 2, row_align))

    M_pad = _round_up(M, tm)
    x2d = x.reshape(M, D).astype(mxu_dtype)
    if M_pad != M:
        x2d = jnp.pad(x2d, ((0, M_pad - M), (0, 0)))

    if params["resident"]:
        kernel = functools.partial(_ffn_resident_kernel, H=H, approx_gelu=approx_gelu)
        out2d = pl.pallas_call(
            kernel,
            out_shape=jax.ShapeDtypeStruct((M_pad, D), out_dtype),
            grid_spec=pltpu.PrefetchScalarGridSpec(
                num_scalar_prefetch=0,
                grid=(M_pad // tm,),
                in_specs=[
                    pl.BlockSpec((tm, D), lambda i: (i, 0)),        # x row tile
                    pl.BlockSpec((D, 2 * H), lambda i: (0, 0)),     # full fused W1 (resident)
                    pl.BlockSpec((1, 2 * H), lambda i: (0, 0)),     # full b1
                    pl.BlockSpec((H, D), lambda i: (0, 0)),         # full W2 (resident)
                    pl.BlockSpec((1, D), lambda i: (0, 0)),         # b2
                ],
                out_specs=pl.BlockSpec((tm, D), lambda i: (i, 0)),
            ),
            compiler_params=pltpu.CompilerParams(
                dimension_semantics=("parallel",),
                vmem_limit_bytes=chip["vmem_cap"],
            ),
        )(x2d, params["w1"], params["b1"], params["w2"], params["b2"])
    else:
        tn = params["tn"]
        nH = H // tn
        vmem_limit = min(max(int(_stream_est(tm) * 1.3) + (4 << 20), 32 << 20),
                         chip["vmem_cap"])
        kernel = functools.partial(_ffn_streamed_kernel, approx_gelu=approx_gelu)
        out2d = pl.pallas_call(
            kernel,
            out_shape=jax.ShapeDtypeStruct((M_pad, D), out_dtype),
            grid_spec=pltpu.PrefetchScalarGridSpec(
                num_scalar_prefetch=0,
                grid=(M_pad // tm, nH),
                in_specs=[
                    pl.BlockSpec((tm, D), lambda i, j: (i, 0)),     # x row tile
                    pl.BlockSpec((D, tn), lambda i, j: (0, j)),     # W1 "a" column tile
                    pl.BlockSpec((D, tn), lambda i, j: (0, j)),     # W1 "gates" column tile
                    pl.BlockSpec((1, tn), lambda i, j: (0, j)),     # b1 "a" tile
                    pl.BlockSpec((1, tn), lambda i, j: (0, j)),     # b1 "gates" tile
                    pl.BlockSpec((tn, D), lambda i, j: (j, 0)),     # W2 row tile
                    pl.BlockSpec((1, D), lambda i, j: (0, 0)),      # b2
                ],
                out_specs=pl.BlockSpec((tm, D), lambda i, j: (i, 0)),
                scratch_shapes=[pltpu.VMEM((tm, D), jnp.float32)],
            ),
            compiler_params=pltpu.CompilerParams(
                dimension_semantics=("parallel", "arbitrary"),
                vmem_limit_bytes=vmem_limit,
            ),
        )(x2d, params["w1a"], params["w1g"], params["b1a"], params["b1g"],
          params["w2"], params["b2"])

    # Padded rows carry bias-driven garbage; slicing them off here is load-bearing.
    return out2d[:M].reshape(B, S, D)


def init_params(key, dim, mult=4, dtype=jnp.float32):
    """Deterministic synthetic parameters (shapes match the nn.Linear layers)."""
    hidden = dim * mult
    k1, k2, k3, k4 = jax.random.split(key, 4)
    # Linear(dim, dim*mult*2): torch weight (2*hidden, dim) -> stored transposed (dim, 2*hidden)
    w1 = jax.random.normal(k1, (dim, 2 * hidden), dtype) * (1.0 / jnp.sqrt(dim))
    b1 = jax.random.normal(k2, (2 * hidden,), dtype) * 0.01
    # Linear(hidden, dim): stored as (hidden, dim)
    w2 = jax.random.normal(k3, (hidden, dim), dtype) * (1.0 / jnp.sqrt(hidden))
    b2 = jax.random.normal(k4, (dim,), dtype) * 0.01
    return w1, b1, w2, b2


if __name__ == "__main__":
    key = jax.random.PRNGKey(0)
    B, S, dim, mult = 2, 8, 32, 4

    kx, kp = jax.random.split(key)
    x = jax.random.normal(kx, (B, S, dim), jnp.float32)
    w1, b1, w2, b2 = init_params(kp, dim, mult)

    # Pure-JAX reference (GEGLU feed-forward; dropout = identity in eval mode).
    h = x.reshape(-1, dim) @ w1 + b1
    a, g = jnp.split(h, 2, axis=-1)
    ref = ((a * jax.nn.gelu(g, approximate=False)) @ w2 + b2).reshape(B, S, dim)

    # Default inference path: one-time prepared bf16 params, weight-resident kernel.
    p_bf16 = prepare_ffn_params(w1, b1, w2, b2, use_bf16=True)
    out_bf16 = jax.block_until_ready(feed_forward(x, p_bf16))

    # Exact f32 path (erf gelu), weight-resident kernel.
    p_f32 = prepare_ffn_params(w1, b1, w2, b2, use_bf16=False)
    out_f32 = jax.block_until_ready(feed_forward(x, p_f32))

    # Streamed (hidden-tiled, f32 accumulator) path, exercised explicitly for coverage.
    p_stream = prepare_ffn_params(w1, b1, w2, b2, use_bf16=False, force_streamed=True)
    out_stream = jax.block_until_ready(feed_forward(x, p_stream))

    assert out_bf16.shape == (B, S, dim)
    assert jnp.allclose(out_f32, ref, atol=1e-5, rtol=1e-5), "f32 resident path mismatch"
    assert jnp.allclose(out_stream, ref, atol=1e-5, rtol=1e-5), "f32 streamed path mismatch"
    assert jnp.allclose(out_bf16, ref, atol=5e-2, rtol=5e-2), "bf16 path mismatch"
    print("KERNEL_OK")
</pallas_src>

<mosaic_0001>
module attributes {stable_mosaic.version = 11 : i64} {
  func.func @_ffn_resident_kernel(%arg0: i32, %arg1: memref<16x32xbf16, #tpu.memory_space<vmem>>, %arg2: memref<32x256xbf16, #tpu.memory_space<vmem>>, %arg3: memref<1x256xf32, #tpu.memory_space<vmem>>, %arg4: memref<128x32xbf16, #tpu.memory_space<vmem>>, %arg5: memref<1x32xf32, #tpu.memory_space<vmem>>, %arg6: memref<16x32xf32, #tpu.memory_space<vmem>>) attributes {dimension_semantics = [#tpu.dimension_semantics<parallel>], iteration_bounds = array<i64: 1>, scalar_prefetch = 0 : i64, scratch_operands = 0 : i64, tpu.core_type = #tpu.core_type<tc>, window_params = [{transform_indices = @transform_0, window_bounds = array<i64: 16, 32>}, {pipeline_mode = #tpu.pipeline_mode<synchronous>, transform_indices = @transform_1, window_bounds = array<i64: 32, 256>}, {pipeline_mode = #tpu.pipeline_mode<synchronous>, transform_indices = @transform_2, window_bounds = array<i64: 1, 256>}, {pipeline_mode = #tpu.pipeline_mode<synchronous>, transform_indices = @transform_3, window_bounds = array<i64: 128, 32>}, {pipeline_mode = #tpu.pipeline_mode<synchronous>, transform_indices = @transform_4, window_bounds = array<i64: 1, 32>}, {transform_indices = @transform_5, window_bounds = array<i64: 16, 32>}]} {
    %c0 = arith.constant 0 : index
    %c0_0 = arith.constant 0 : index
    %0 = vector.load %arg1[%c0, %c0_0] : memref<16x32xbf16, #tpu.memory_space<vmem>>, vector<16x32xbf16>
    %c0_1 = arith.constant 0 : index
    %c0_2 = arith.constant 0 : index
    %1 = vector.load %arg2[%c0_1, %c0_2] : memref<32x256xbf16, #tpu.memory_space<vmem>>, vector<32x256xbf16>
    %cst = arith.constant dense<0.000000e+00> : vector<16x256xf32>
    %2 = tpu.matmul %0, %1, %cst {dimension_numbers = #tpu.dot_dimension_numbers<[1], [0], [0], [1], [0, 0, 1, 1], [], []>} : vector<16x32xbf16>, vector<32x256xbf16>, vector<16x256xf32> -> vector<16x256xf32>
    %c0_3 = arith.constant 0 : index
    %c0_4 = arith.constant 0 : index
    %3 = vector.load %arg3[%c0_3, %c0_4] : memref<1x256xf32, #tpu.memory_space<vmem>>, vector<1x256xf32>
    %4 = vector.broadcast %3 : vector<1x256xf32> to vector<16x256xf32>
    %5 = arith.addf %2, %4 : vector<16x256xf32>
    %6 = vector.extract_strided_slice %5 {offsets = [0, 0], sizes = [16, 128], strides = [1, 1]} : vector<16x256xf32> to vector<16x128xf32>
    %7 = vector.extract_strided_slice %5 {offsets = [0, 128], sizes = [16, 128], strides = [1, 1]} : vector<16x256xf32> to vector<16x128xf32>
    %8 = arith.mulf %7, %7 : vector<16x128xf32>
    %9 = arith.mulf %7, %8 : vector<16x128xf32>
    %cst_5 = arith.constant 4.471500e-02 : f32
    %10 = vector.broadcast %cst_5 : f32 to vector<16x128xf32>
    %11 = arith.mulf %10, %9 : vector<16x128xf32>
    %12 = arith.addf %7, %11 : vector<16x128xf32>
    %cst_6 = arith.constant 0.797884583 : f32
    %13 = vector.broadcast %cst_6 : f32 to vector<16x128xf32>
    %14 = arith.mulf %13, %12 : vector<16x128xf32>
    %15 = math.tanh %14 : vector<16x128xf32>
    %cst_7 = arith.constant 1.000000e+00 : f32
    %16 = vector.broadcast %cst_7 : f32 to vector<16x128xf32>
    %17 = arith.addf %16, %15 : vector<16x128xf32>
    %cst_8 = arith.constant 5.000000e-01 : f32
    %18 = vector.broadcast %cst_8 : f32 to vector<16x128xf32>
    %19 = arith.mulf %18, %17 : vector<16x128xf32>
    %20 = arith.mulf %7, %19 : vector<16x128xf32>
    %21 = arith.mulf %6, %20 : vector<16x128xf32>
    %22 = arith.truncf %21 : vector<16x128xf32> to vector<16x128xbf16>
    %c0_9 = arith.constant 0 : index
    %c0_10 = arith.constant 0 : index
    %23 = vector.load %arg4[%c0_9, %c0_10] : memref<128x32xbf16, #tpu.memory_space<vmem>>, vector<128x32xbf16>
    %cst_11 = arith.constant dense<0.000000e+00> : vector<16x32xf32>
    %24 = tpu.matmul %22, %23, %cst_11 {dimension_numbers = #tpu.dot_dimension_numbers<[1], [0], [0], [1], [0, 0, 1, 1], [], []>} : vector<16x128xbf16>, vector<128x32xbf16>, vector<16x32xf32> -> vector<16x32xf32>
    %c0_12 = arith.constant 0 : index
    %c0_13 = arith.constant 0 : index
    %25 = vector.load %arg5[%c0_12, %c0_13] : memref<1x32xf32, #tpu.memory_space<vmem>>, vector<1x32xf32>
    %26 = vector.broadcast %25 : vector<1x32xf32> to vector<16x32xf32>
    %27 = arith.addf %24, %26 : vector<16x32xf32>
    %c0_14 = arith.constant 0 : index
    %c0_15 = arith.constant 0 : index
    %28 = vector.load %arg6[%c0_14, %c0_15] : memref<16x32xf32, #tpu.memory_space<vmem>>, vector<16x32xf32>
    tpu.vector_store %arg6[%c0_14, %c0_15], %27 {strides = array<i32>} : memref<16x32xf32, #tpu.memory_space<vmem>>, vector<16x32xf32>,
    return
  }
  func.func @transform_0(%arg0: i32) -> (i32, i32) {
    %c0_i32 = arith.constant 0 : i32
    %c0_i32_0 = arith.constant 0 : i32
    return %arg0, %c0_i32 : i32, i32
  }
  func.func @transform_1(%arg0: i32) -> (i32, i32) {
    %c0_i32 = arith.constant 0 : i32
    %c0_i32_0 = arith.constant 0 : i32
    %c0_i32_1 = arith.constant 0 : i32
    return %c0_i32, %c0_i32_0 : i32, i32
  }
  func.func @transform_2(%arg0: i32) -> (i32, i32) {
    %c0_i32 = arith.constant 0 : i32
    %c0_i32_0 = arith.constant 0 : i32
    %c0_i32_1 = arith.constant 0 : i32
    return %c0_i32, %c0_i32_0 : i32, i32
  }
  func.func @transform_3(%arg0: i32) -> (i32, i32) {
    %c0_i32 = arith.constant 0 : i32
    %c0_i32_0 = arith.constant 0 : i32
    %c0_i32_1 = arith.constant 0 : i32
    return %c0_i32, %c0_i32_0 : i32, i32
  }
  func.func @transform_4(%arg0: i32) -> (i32, i32) {
    %c0_i32 = arith.constant 0 : i32
    %c0_i32_0 = arith.constant 0 : i32
    %c0_i32_1 = arith.constant 0 : i32
    return %c0_i32, %c0_i32_0 : i32, i32
  }
  func.func @transform_5(%arg0: i32) -> (i32, i32) {
    %c0_i32 = arith.constant 0 : i32
    %c0_i32_0 = arith.constant 0 : i32
    return %arg0, %c0_i32 : i32, i32
  }
}

</mosaic_0001>

<bundles_post_ra>
// kernel: tpu_custom_call.1
= control target key start
LH: loop header
LB: loop body
LE: loop exit
PB: predicated region body
PF: predicated region fallthrough
CT: control target
= control target key end

     0   :  { %s412_s0 = inlined_call_operand.vmem [shape: bf16[16,32], index: 0, kind: input, shape index: {}]   ;;  %s413_s1 = inlined_call_operand.vmem [shape: bf16[32,256], index: 1, kind: input, shape index: {}]   ;;  %s414_s2 = inlined_call_operand.vmem [shape: f32[1,256], index: 2, kind: input, shape index: {}]   ;;  %s415_s3 = inlined_call_operand.vmem [shape: bf16[128,32], index: 3, kind: input, shape index: {}]   ;;  %s416_s4 = inlined_call_operand.vmem [shape: f32[1,32], index: 4, kind: input, shape index: {}]   ;;  %s417_s5 = inlined_call_operand.hbm [shape: f32[16,32], index: 5, kind: output, shape index: {}]  }
   0x1   :  { %v271_v0 = vld [vmem:[%s413_s1 + $0x14] sm:$0xf]  ;;  %v230_v1 = vld [vmem:[%s413_s1 + $0x18] sm:$0xf0]  ;;  %v269_v2 = vld [vmem:[%s413_s1 + $0x4] sm:$0xf] }
   0x2   :  { %v233_v3 = vor.u32 %v271_v0, %v230_v1  ;;  %v222_v4 = vld [vmem:[%s413_s1 + $0x8] sm:$0xf0]  ;;  %v228_v5 = vld [vmem:[%s413_s1 + $0x10] sm:$0xf]  ;;  %v272_v6 = vld [vmem:[%s413_s1 + $0x14] sm:$0xf0] }
   0x3   :  { %v220_v7 = vld [vmem:[%s413_s1] sm:$0xf]  ;;  %v270_v8 = vld [vmem:[%s413_s1 + $0x4] sm:$0xf0]  ;;  %v225_v9 = vor.u32 %v269_v2, %v222_v4  ;;  %v229_v10 = vor.u32 %v272_v6, %v228_v5 }
   0x4   :  { %83 = vmatpush.bf16.msra.mxu1 %v233_v3 }
   0x5   :  { %10 = vsyncpa [#allocation3], 0  ;;  %69 = vmatpush.bf16.msra.mxu0 %v229_v10  ;;  %v221_v11 = vor.u32 %v270_v8, %v220_v7  ;;  %v268_v12 = vld [vmem:[%s412_s0] sm:$0xff]  ;;  %vm59_vm0 = vcmask 261120   ;;  %v280_v13 = vld [vmem:[%s415_s3 + $0x38] sm:$0xff]  ;;  %s315_s27 = smov [#allocation2]  }
   0x6   :  { %180 = vmatpush.bf16.msra.mxu2 %v280_v13  ;;  %v279_v14 = vld [vmem:[%s415_s3 + $0x30] sm:$0xff]  ;;  %v278_v15 = vld [vmem:[%s415_s3 + $0x28] sm:$0xff]  ;;  %v277_v16 = vld [vmem:[%s415_s3 + $0x20] sm:$0xff]  ;;  %s200_s28 = sshll.u32 %s315_s27, 4  ;;  %s202_s6 = sshll.u32 %s417_s5, 4  ;;  %s201_s28 = int_to_ptr.vmem [resolvable:$true] %s200_s28  ;;  %s203_s6 = int_to_ptr.hbm [resolvable:$true] %s202_s6 }
   0x7   :  { %v276_v17 = vld [vmem:[%s415_s3 + $0x18] sm:$0xff]  ;;  %v275_v18 = vld [vmem:[%s415_s3 + $0x10] sm:$0xff]  ;;  %v28_v19 = vld [vmem:[%s414_s2] sm:$0x3]  ;;  %s316_s7 = smov 128   ;;  %s317_s8 = smov 8  }
   0x8   :  { %84 = vmatpush.bf16.msra.mxu1 %v225_v9  ;;  %v31_v20 = vperm.slane %v28_v19, 1  ;;  %v274_v21 = vld [vmem:[%s415_s3 + $0x8] sm:$0xff]  ;;  %v273_v24 = vld [vmem:[%s415_s3] sm:$0xff]  ;;  %v30_v40 = vperm.slane %v28_v19, 0 }
   0x9   :  { %70 = vmatpush.bf16.msra.mxu0 %v221_v11  ;;  %v284_v53 = vld [vmem:[%s416_s4] ss:$0 sm:$0xff] }
   0xa   :  { %181 = vmatpush.bf16.msra.mxu2 %v279_v14 }
   0xb   :  { %235 = vmatmul.msk.bf16.vlgmr.msra.gmra.mxu1 %vm59_vm0, %v268_v12 }
   0xc   :  { %234 = vmatmul.msk.bf16.vlgmr.msra.gmra.mxu0 %vm59_vm0, %v268_v12 }
   0xe   :  { %182 = vmatpush.bf16.msra.mxu2 %v278_v15 }
  0x12   :  { %183 = vmatpush.bf16.msra.mxu2 %v277_v16 }
  0x16   :  { %184 = vmatpush.bf16.msra.mxu2 %v276_v17 }
  0x1a   :  { %185 = vmatpush.bf16.msra.mxu2 %v275_v18 }
  0x1e   :  { %186 = vmatpush.bf16.msra.mxu2 %v274_v21 }
  0x22   :  { %187 = vmatpush.bf16.msra.mxu2 %v273_v24 }
  0x88   :  { %v86_v22 = vpop.f32.mrf.mxu1 }
  0x89   :  { %v87_v23 = vadd.f32 %v86_v22, %v31_v20  ;;  %v72_v38 = vpop.f32.mrf.mxu0 }
  0x8a   :  { %v73_v45 = vadd.f32 %v72_v38, %v30_v40 }
  0x8b   :  { %v91_v25 = vmul.f32 %v87_v23, %v87_v23 }
  0x8d   :  { %v93_v26 = vmul.f32 %v91_v25, %v87_v23 }
  0x8f   :  { %v95_v27 = vmul.f32 0.044715, %v93_v26 }
  0x90   :  { %v88_v28 = vpop.f32.mrf.mxu1 }
  0x91   :  { %v97_v29 = vadd.f32 %v95_v27, %v87_v23  ;;  %v89_v30 = vadd.f32 %v88_v28, %v31_v20  ;;  %v74_v44 = vpop.f32.mrf.mxu0 }
  0x92   :  { %v75_v48 = vadd.f32 %v74_v44, %v30_v40 }
  0x93   :  { %v99_v31 = vmul.f32 0.7978846, %v97_v29  ;;  %v92_v32 = vmul.f32 %v89_v30, %v89_v30 }
  0x95   :  { %v94_v33 = vmul.f32 %v92_v32, %v89_v30  ;;  %285 = vtanh.f32 %v99_v31 }
  0x97   :  { %v96_v34 = vmul.f32 0.044715, %v94_v33 }
  0x99   :  { %v98_v35 = vadd.f32 %v96_v34, %v89_v30 }
  0x9b   :  { %v286_v36 = vpop.eup %285  ;;  %v100_v37 = vmul.f32 0.7978846, %v98_v35 }
  0x9c   :  { %v103_v39 = vadd.f32 1.0, %v286_v36 }
  0x9d   :  { %287 = vtanh.f32 %v100_v37 }
  0x9e   :  { %v105_v41 = vmul.f32 0.5, %v103_v39 }
  0xa0   :  { %v107_v46 = vmul.f32 %v105_v41, %v87_v23 }
  0xa2   :  { %v109_v50 = vmul.f32 %v107_v46, %v73_v45 }
  0xa3   :  { %v288_v42 = vpop.eup %287 }
  0xa4   :  { %v104_v43 = vadd.f32 1.0, %v288_v42 }
  0xa6   :  { %v106_v47 = vmul.f32 0.5, %v104_v43 }
  0xa8   :  { %v108_v49 = vmul.f32 %v106_v47, %v89_v30 }
  0xaa   :  { %v110_v51 = vmul.f32 %v108_v49, %v75_v48 }
  0xac   :  { %v111_v52 = vpack.c.bf16 %v110_v51, %v109_v50 }
  0xae   :  { %188 = vmatmul.bf16.vlgmr.msra.gmra.mxu2 %v111_v52 }
 0x131   :  { %v189_v54 = vpop.f32.mrf.mxu2 }
 0x132   :  { %v190_v55 = vadd.f32 %v284_v53, %v189_v54 }
 0x134   :  { %194 = vst.msk [vmem:[#allocation2] sm:$0xff] %vm59_vm0, %v190_v55 }
 0x139   :  { %v191_v56 = vpop.f32.mrf.mxu2 }
 0x13a   :  { %v192_v57 = vadd.f32 %v284_v53, %v191_v56 }
 0x13c   :  { %195 = vst.msk [vmem:[#allocation2 + $0x8] sm:$0xff] %vm59_vm0, %v192_v57 }
 0x13d   :  { %208 = dma.vmem_to_hbm [thread:$0]  %s201_s28, 256, %s203_s6, [#allocation3], %s316_s7, %s316_s7, %s317_s8  }
 0x13e   :  { %313 = dma.done.wait [#allocation3], 256  }
 0x13f   :  { %314 = vsyncadd [#allocation3], 4294967040 }
 0x140   :  { %213 = vsyncpa [#allocation3], 1 }

</bundles_post_ra>
